<compile_context>
chip_gen: v7x
topology: tpu7x:2x2x1
jax: 0.10.0
libtpu: 0.0.40
codegen_flags: <defaults>
</compile_context>

<pallas_src>
import functools

import jax
import jax.numpy as jnp
from jax.experimental import pallas as pl
from jax.experimental.pallas import tpu as pltpu

BN_EPS = 1e-5


def _mlp_bn_kernel(x_ref, w1_ref, b1_ref, gamma_ref, beta_ref, w2_ref, b2_ref,
                   o_ref, acc_ref):
    j = pl.program_id(0)

    @pl.when(j == 0)
    def _():
        acc_ref[...] = jnp.zeros_like(acc_ref)

    # ---- linear_1 on this hidden tile: x @ W1[:, jH] + b1[jH]  (MXU) ----
    x = x_ref[...]
    h = jnp.dot(x, w1_ref[...], preferred_element_type=jnp.float32)
    h = h + b1_ref[...]                                   # (B, tH)

    # ---- BatchNorm1d (training mode, biased variance), one-pass stats,
    #      folded into a single per-feature scale/shift ----
    inv_b = 1.0 / h.shape[0]
    sum_h = jnp.sum(h, axis=0, keepdims=True)             # (1, tH)
    sum_h2 = jnp.sum(h * h, axis=0, keepdims=True)        # (1, tH)
    mean = sum_h * inv_b
    var = jnp.maximum(sum_h2 * inv_b - mean * mean, 0.0)
    scale = gamma_ref[...] * jax.lax.rsqrt(var + BN_EPS)  # (1, tH)
    shift = beta_ref[...] - mean * scale                  # (1, tH)

    # ---- BN apply + ReLU (2 VPU ops/elem) ----
    a = jnp.maximum(h * scale + shift, 0.0)

    # ---- linear_2 partial product for this hidden tile, f32 accumulate ----
    acc_ref[...] += jnp.dot(a, w2_ref[...], preferred_element_type=jnp.float32)

    @pl.when(j == pl.num_programs(0) - 1)
    def _():
        o_ref[...] = (acc_ref[...] + b2_ref[...]).astype(o_ref.dtype)


def _round_up(n, m):
    return ((n + m - 1) // m) * m


@functools.partial(jax.jit, static_argnames=("th_max",))
def olivettiface_forward(x, w1, b1, gamma, beta, w2, b2, *, th_max=512):
    """Forward pass (y=None branch): returns logits of shape (B, output_size).

    Weights are passed pre-transposed as (in_features, out_features).
    """
    B, I = x.shape
    H = w1.shape[1]
    O = w2.shape[1]

    # Lane-pad feature dims to multiples of 128 (never the batch axis).
    H_pad = _round_up(H, 128)
    O_pad = _round_up(O, 128)

    # Padded w1 cols / b1 / beta are 0 and padded w2 rows are 0, so padded
    # hidden features contribute exactly 0 to the (padded) output columns,
    # which are sliced off anyway.  Padded gamma = 1 keeps BN well-defined.
    w1_p = jnp.pad(w1, ((0, 0), (0, H_pad - H)))
    b1_p = jnp.pad(b1, ((0, 0), (0, H_pad - H)))
    gamma_p = jnp.pad(gamma, ((0, 0), (0, H_pad - H)), constant_values=1.0)
    beta_p = jnp.pad(beta, ((0, 0), (0, H_pad - H)))
    w2_p = jnp.pad(w2, ((0, H_pad - H), (0, O_pad - O)))
    b2_p = jnp.pad(b2, ((0, 0), (0, O_pad - O)))

    # Hidden-tile size: largest multiple of 128 <= th_max that divides H_pad.
    tH = _round_up(min(th_max, H_pad), 128)
    while H_pad % tH != 0:
        tH -= 128
    n_h = H_pad // tH

    out_padded = pl.pallas_call(
        _mlp_bn_kernel,
        out_shape=jax.ShapeDtypeStruct((B, O_pad), jnp.float32),
        grid_spec=pltpu.PrefetchScalarGridSpec(
            num_scalar_prefetch=0,
            grid=(n_h,),
            in_specs=[
                pl.BlockSpec((B, I), lambda j: (0, 0)),        # x (resident)
                pl.BlockSpec((I, tH), lambda j: (0, j)),       # w1 tile
                pl.BlockSpec((1, tH), lambda j: (0, j)),       # b1 tile
                pl.BlockSpec((1, tH), lambda j: (0, j)),       # gamma tile
                pl.BlockSpec((1, tH), lambda j: (0, j)),       # beta tile
                pl.BlockSpec((tH, O_pad), lambda j: (j, 0)),   # w2 tile
                pl.BlockSpec((1, O_pad), lambda j: (0, 0)),    # b2 (resident)
            ],
            out_specs=pl.BlockSpec((B, O_pad), lambda j: (0, 0)),
            scratch_shapes=[pltpu.VMEM((B, O_pad), jnp.float32)],
        ),
        compiler_params=pltpu.CompilerParams(
            dimension_semantics=("arbitrary",),
            vmem_limit_bytes=32 * 1024 * 1024,
        ),
    )(x, w1_p, b1_p, gamma_p, beta_p, w2_p, b2_p)

    return out_padded[:, :O]


def reference_forward(x, w1, b1, gamma, beta, w2, b2):
    """Plain-JAX reference replicating the PyTorch module's forward."""
    h = x @ w1 + b1
    mean = jnp.mean(h, axis=0, keepdims=True)
    var = jnp.mean((h - mean) ** 2, axis=0, keepdims=True)
    h = (h - mean) / jnp.sqrt(var + BN_EPS) * gamma + beta
    a = jnp.maximum(h, 0.0)
    return a @ w2 + b2


if __name__ == "__main__":
    # Small shapes consistent with the module (input_size -> hidden -> output).
    batch = 16
    input_size = 64
    hidden_size = 32
    output_size = 8

    key = jax.random.PRNGKey(0)
    kx, k1, kb1, k2, kb2 = jax.random.split(key, 5)

    x = jax.random.normal(kx, (batch, input_size), dtype=jnp.float32)

    # Deterministic parameter init (PyTorch-Linear-like uniform bounds),
    # weights stored as (in_features, out_features).
    bound1 = 1.0 / (input_size ** 0.5)
    w1 = jax.random.uniform(k1, (input_size, hidden_size), jnp.float32,
                            -bound1, bound1)
    b1 = jax.random.uniform(kb1, (1, hidden_size), jnp.float32, -bound1, bound1)

    bound2 = 1.0 / (hidden_size ** 0.5)
    w2 = jax.random.uniform(k2, (hidden_size, output_size), jnp.float32,
                            -bound2, bound2)
    b2 = jax.random.uniform(kb2, (1, output_size), jnp.float32, -bound2, bound2)

    # BatchNorm1d affine parameters at their default init.
    gamma = jnp.ones((1, hidden_size), jnp.float32)
    beta = jnp.zeros((1, hidden_size), jnp.float32)

    out = olivettiface_forward(x, w1, b1, gamma, beta, w2, b2)
    out = jax.block_until_ready(out)

    ref = reference_forward(x, w1, b1, gamma, beta, w2, b2)
    assert out.shape == (batch, output_size)
    assert jnp.allclose(out, ref, atol=1e-4, rtol=1e-4)

    # Note: the `y is not None` branch (CrossEntropyLoss) is training-only glue
    # and not part of the inference hot path; the logits branch is implemented.
    print("KERNEL_OK")
</pallas_src>

<mosaic_0001>
module attributes {stable_mosaic.version = 11 : i64} {
  func.func @_mlp_bn_kernel(%arg0: i32, %arg1: memref<16x64xf32, #tpu.memory_space<vmem>>, %arg2: memref<64x128xf32, #tpu.memory_space<vmem>>, %arg3: memref<1x128xf32, #tpu.memory_space<vmem>>, %arg4: memref<1x128xf32, #tpu.memory_space<vmem>>, %arg5: memref<1x128xf32, #tpu.memory_space<vmem>>, %arg6: memref<128x128xf32, #tpu.memory_space<vmem>>, %arg7: memref<1x128xf32, #tpu.memory_space<vmem>>, %arg8: memref<16x128xf32, #tpu.memory_space<vmem>>, %arg9: memref<16x128xf32, #tpu.memory_space<vmem>>) attributes {dimension_semantics = [#tpu.dimension_semantics<arbitrary>], iteration_bounds = array<i64: 1>, scalar_prefetch = 0 : i64, scratch_operands = 1 : i64, tpu.core_type = #tpu.core_type<tc>, window_params = [{pipeline_mode = #tpu.pipeline_mode<synchronous>, transform_indices = @transform_0, window_bounds = array<i64: 16, 64>}, {transform_indices = @transform_1, window_bounds = array<i64: 64, 128>}, {transform_indices = @transform_2, window_bounds = array<i64: 1, 128>}, {transform_indices = @transform_3, window_bounds = array<i64: 1, 128>}, {transform_indices = @transform_4, window_bounds = array<i64: 1, 128>}, {transform_indices = @transform_5, window_bounds = array<i64: 128, 128>}, {pipeline_mode = #tpu.pipeline_mode<synchronous>, transform_indices = @transform_6, window_bounds = array<i64: 1, 128>}, {pipeline_mode = #tpu.pipeline_mode<synchronous>, transform_indices = @transform_7, window_bounds = array<i64: 16, 128>}]} {
    %c0_i32 = arith.constant 0 : i32
    %0 = arith.cmpi eq, %arg0, %c0_i32 : i32
    %1 = arith.extui %0 : i1 to i32
    %c0_i32_0 = arith.constant 0 : i32
    %2 = arith.cmpi ne, %1, %c0_i32_0 : i32
    scf.if %2 {
      %cst_26 = arith.constant 0.000000e+00 : f32
      %44 = vector.broadcast %cst_26 : f32 to vector<16x128xf32>
      %c0_27 = arith.constant 0 : index
      %c0_28 = arith.constant 0 : index
      %45 = vector.load %arg9[%c0_27, %c0_28] : memref<16x128xf32, #tpu.memory_space<vmem>>, vector<16x128xf32>
      tpu.vector_store %arg9[%c0_27, %c0_28], %44 {strides = array<i32>} : memref<16x128xf32, #tpu.memory_space<vmem>>, vector<16x128xf32>,
    } else {
    }
    %c0 = arith.constant 0 : index
    %c0_1 = arith.constant 0 : index
    %3 = vector.load %arg1[%c0, %c0_1] : memref<16x64xf32, #tpu.memory_space<vmem>>, vector<16x64xf32>
    %c0_2 = arith.constant 0 : index
    %c0_3 = arith.constant 0 : index
    %4 = vector.load %arg2[%c0_2, %c0_3] : memref<64x128xf32, #tpu.memory_space<vmem>>, vector<64x128xf32>
    %cst = arith.constant dense<0.000000e+00> : vector<16x128xf32>
    %5 = tpu.matmul %3, %4, %cst {dimension_numbers = #tpu.dot_dimension_numbers<[1], [0], [0], [1], [0, 0, 1, 1], [], []>} : vector<16x64xf32>, vector<64x128xf32>, vector<16x128xf32> -> vector<16x128xf32>
    %c0_4 = arith.constant 0 : index
    %c0_5 = arith.constant 0 : index
    %6 = vector.load %arg3[%c0_4, %c0_5] : memref<1x128xf32, #tpu.memory_space<vmem>>, vector<1x128xf32>
    %7 = vector.broadcast %6 : vector<1x128xf32> to vector<16x128xf32>
    %8 = arith.addf %5, %7 : vector<16x128xf32>
    %cst_6 = arith.constant dense<0.000000e+00> : vector<128xf32>
    %9 = vector.multi_reduction <add>, %8, %cst_6 [0] : vector<16x128xf32> to vector<128xf32>
    %10 = vector.shape_cast %9 : vector<128xf32> to vector<1x128xf32>
    %11 = arith.mulf %8, %8 : vector<16x128xf32>
    %cst_7 = arith.constant dense<0.000000e+00> : vector<128xf32>
    %12 = vector.multi_reduction <add>, %11, %cst_7 [0] : vector<16x128xf32> to vector<128xf32>
    %13 = vector.shape_cast %12 : vector<128xf32> to vector<1x128xf32>
    %cst_8 = arith.constant 6.250000e-02 : f32
    %14 = vector.broadcast %cst_8 : f32 to vector<1x128xf32>
    %15 = arith.mulf %10, %14 : vector<1x128xf32>
    %cst_9 = arith.constant 6.250000e-02 : f32
    %16 = vector.broadcast %cst_9 : f32 to vector<1x128xf32>
    %17 = arith.mulf %13, %16 : vector<1x128xf32>
    %18 = arith.mulf %15, %15 : vector<1x128xf32>
    %19 = arith.subf %17, %18 : vector<1x128xf32>
    %cst_10 = arith.constant 0.000000e+00 : f32
    %20 = vector.broadcast %cst_10 : f32 to vector<1x128xf32>
    %21 = arith.maximumf %19, %20 : vector<1x128xf32>
    %c0_11 = arith.constant 0 : index
    %c0_12 = arith.constant 0 : index
    %22 = vector.load %arg4[%c0_11, %c0_12] : memref<1x128xf32, #tpu.memory_space<vmem>>, vector<1x128xf32>
    %cst_13 = arith.constant 9.99999974E-6 : f32
    %23 = vector.broadcast %cst_13 : f32 to vector<1x128xf32>
    %24 = arith.addf %21, %23 : vector<1x128xf32>
    %25 = math.rsqrt %24 : vector<1x128xf32>
    %26 = arith.mulf %22, %25 : vector<1x128xf32>
    %c0_14 = arith.constant 0 : index
    %c0_15 = arith.constant 0 : index
    %27 = vector.load %arg5[%c0_14, %c0_15] : memref<1x128xf32, #tpu.memory_space<vmem>>, vector<1x128xf32>
    %28 = arith.mulf %15, %26 : vector<1x128xf32>
    %29 = arith.subf %27, %28 : vector<1x128xf32>
    %30 = vector.broadcast %26 : vector<1x128xf32> to vector<16x128xf32>
    %31 = arith.mulf %8, %30 : vector<16x128xf32>
    %32 = vector.broadcast %29 : vector<1x128xf32> to vector<16x128xf32>
    %33 = arith.addf %31, %32 : vector<16x128xf32>
    %cst_16 = arith.constant 0.000000e+00 : f32
    %34 = vector.broadcast %cst_16 : f32 to vector<16x128xf32>
    %35 = arith.maximumf %33, %34 : vector<16x128xf32>
    %c0_17 = arith.constant 0 : index
    %c0_18 = arith.constant 0 : index
    %36 = vector.load %arg9[%c0_17, %c0_18] : memref<16x128xf32, #tpu.memory_space<vmem>>, vector<16x128xf32>
    %c0_19 = arith.constant 0 : index
    %c0_20 = arith.constant 0 : index
    %37 = vector.load %arg6[%c0_19, %c0_20] : memref<128x128xf32, #tpu.memory_space<vmem>>, vector<128x128xf32>
    %cst_21 = arith.constant dense<0.000000e+00> : vector<16x128xf32>
    %38 = tpu.matmul %35, %37, %cst_21 {dimension_numbers = #tpu.dot_dimension_numbers<[1], [0], [0], [1], [0, 0, 1, 1], [], []>} : vector<16x128xf32>, vector<128x128xf32>, vector<16x128xf32> -> vector<16x128xf32>
    %39 = arith.addf %36, %38 : vector<16x128xf32>
    %c0_22 = arith.constant 0 : index
    %c0_23 = arith.constant 0 : index
    %40 = vector.load %arg9[%c0_22, %c0_23] : memref<16x128xf32, #tpu.memory_space<vmem>>, vector<16x128xf32>
    tpu.vector_store %arg9[%c0_22, %c0_23], %39 {strides = array<i32>} : memref<16x128xf32, #tpu.memory_space<vmem>>, vector<16x128xf32>,
    %c0_i32_24 = arith.constant 0 : i32
    %41 = arith.cmpi eq, %arg0, %c0_i32_24 : i32
    %42 = arith.extui %41 : i1 to i32
    %c0_i32_25 = arith.constant 0 : i32
    %43 = arith.cmpi ne, %42, %c0_i32_25 : i32
    scf.if %43 {
      %c0_26 = arith.constant 0 : index
      %c0_27 = arith.constant 0 : index
      %44 = vector.load %arg9[%c0_26, %c0_27] : memref<16x128xf32, #tpu.memory_space<vmem>>, vector<16x128xf32>
      %c0_28 = arith.constant 0 : index
      %c0_29 = arith.constant 0 : index
      %45 = vector.load %arg7[%c0_28, %c0_29] : memref<1x128xf32, #tpu.memory_space<vmem>>, vector<1x128xf32>
      %46 = vector.broadcast %45 : vector<1x128xf32> to vector<16x128xf32>
      %47 = arith.addf %44, %46 : vector<16x128xf32>
      %c0_30 = arith.constant 0 : index
      %c0_31 = arith.constant 0 : index
      %48 = vector.load %arg8[%c0_30, %c0_31] : memref<16x128xf32, #tpu.memory_space<vmem>>, vector<16x128xf32>
      tpu.vector_store %arg8[%c0_30, %c0_31], %47 {strides = array<i32>} : memref<16x128xf32, #tpu.memory_space<vmem>>, vector<16x128xf32>,
    } else {
    }
    return
  }
  func.func @transform_0(%arg0: i32) -> (i32, i32) {
    %c0_i32 = arith.constant 0 : i32
    %c0_i32_0 = arith.constant 0 : i32
    %c0_i32_1 = arith.constant 0 : i32
    return %c0_i32, %c0_i32_0 : i32, i32
  }
  func.func @transform_1(%arg0: i32) -> (i32, i32) {
    %c0_i32 = arith.constant 0 : i32
    %c0_i32_0 = arith.constant 0 : i32
    return %c0_i32, %arg0 : i32, i32
  }
  func.func @transform_2(%arg0: i32) -> (i32, i32) {
    %c0_i32 = arith.constant 0 : i32
    %c0_i32_0 = arith.constant 0 : i32
    return %c0_i32, %arg0 : i32, i32
  }
  func.func @transform_3(%arg0: i32) -> (i32, i32) {
    %c0_i32 = arith.constant 0 : i32
    %c0_i32_0 = arith.constant 0 : i32
    return %c0_i32, %arg0 : i32, i32
  }
  func.func @transform_4(%arg0: i32) -> (i32, i32) {
    %c0_i32 = arith.constant 0 : i32
    %c0_i32_0 = arith.constant 0 : i32
    return %c0_i32, %arg0 : i32, i32
  }
  func.func @transform_5(%arg0: i32) -> (i32, i32) {
    %c0_i32 = arith.constant 0 : i32
    %c0_i32_0 = arith.constant 0 : i32
    return %arg0, %c0_i32 : i32, i32
  }
  func.func @transform_6(%arg0: i32) -> (i32, i32) {
    %c0_i32 = arith.constant 0 : i32
    %c0_i32_0 = arith.constant 0 : i32
    %c0_i32_1 = arith.constant 0 : i32
    return %c0_i32, %c0_i32_0 : i32, i32
  }
  func.func @transform_7(%arg0: i32) -> (i32, i32) {
    %c0_i32 = arith.constant 0 : i32
    %c0_i32_0 = arith.constant 0 : i32
    %c0_i32_1 = arith.constant 0 : i32
    return %c0_i32, %c0_i32_0 : i32, i32
  }
}

</mosaic_0001>

<bundles_post_ra>
// kernel: olivettiface_forward.1
= control target key start
LH: loop header
LB: loop body
LE: loop exit
PB: predicated region body
PF: predicated region fallthrough
CT: control target
= control target key end

     0   :  { %vm49_vm0 = vcmask 523264   ;;  %s568_s1 = inlined_call_operand.vmem [shape: f32[64,128], index: 1, kind: input, shape index: {}]   ;;  %s569_s0 = inlined_call_operand.vmem [shape: f32[16,64], index: 0, kind: input, shape index: {}]   ;;  %s570_s5 = inlined_call_operand.vmem [shape: f32[128,128], index: 5, kind: input, shape index: {}]   ;;  %s571_s2 = inlined_call_operand.vmem [shape: f32[1,128], index: 2, kind: input, shape index: {}]   ;;  %s572_s3 = inlined_call_operand.vmem [shape: f32[1,128], index: 3, kind: input, shape index: {}]   ;;  %s573_s4 = inlined_call_operand.vmem [shape: f32[1,128], index: 4, kind: input, shape index: {}]   ;;  %s574_s6 = inlined_call_operand.vmem [shape: f32[1,128], index: 6, kind: input, shape index: {}]   ;;  %s575_s7 = inlined_call_operand.vmem [shape: f32[16,128], index: 7, kind: output, shape index: {}]  }
   0x1   :  { %v34_v0 = vld [vmem:[%s568_s1] sm:$0xff]  ;;  %v35_v1 = vld [vmem:[%s568_s1 + $0x8] sm:$0xff]  ;;  %v36_v2 = vld [vmem:[%s568_s1 + $0x10] sm:$0xff] }
   0x2   :  { %v380_v3 = vpack.c.bf16 %v35_v1, %v34_v0  ;;  %v37_v4 = vld [vmem:[%s568_s1 + $0x18] sm:$0xff]  ;;  %v38_v6 = vld [vmem:[%s568_s1 + $0x20] sm:$0xff]  ;;  %v39_v7 = vld [vmem:[%s568_s1 + $0x28] sm:$0xff]  ;;  %v160_v1 = vlaneseq }
   0x3   :  { %v384_v5 = vpack.c.bf16 %v37_v4, %v36_v2  ;;  %v32_v8 = vld [vmem:[%s569_s0] sm:$0xff]  ;;  %v388_v9 = vpack.c.bf16 %v39_v7, %v38_v6  ;;  %v40_v10 = vld [vmem:[%s568_s1 + $0x30] sm:$0xff]  ;;  %v41_v11 = vld [vmem:[%s568_s1 + $0x38] sm:$0xff] }
   0x4   :  { %381 = vmatprep.subr.bf16.mxu0 %v380_v3  ;;  %342 = vmatprep.mubr.msk.f32.mxu0 %vm49_vm0, %v32_v8  ;;  %v392_v12 = vpack.c.bf16 %v41_v11, %v40_v10  ;;  %v33_v13 = vld [vmem:[%s569_s0 + $0x8] sm:$0xff]  ;;  %v179_v14 = vld [vmem:[%s570_s5] sm:$0xff]  ;;  %v181_v17 = vld [vmem:[%s570_s5 + $0x10] sm:$0xff]  ;;  %v161_v2 = vshrl.u32 %v160_v1, 7 }
   0x5   :  { %383 = vmatpush3.bf16.msra.mxu0 %v380_v3  ;;  %v180_v15 = vld [vmem:[%s570_s5 + $0x8] sm:$0xff]  ;;  %v182_v18 = vld [vmem:[%s570_s5 + $0x18] sm:$0xff]  ;;  %v183_v19 = vld [vmem:[%s570_s5 + $0x20] sm:$0xff] }
   0x6   :  { %385 = vmatprep.subr.bf16.mxu0 %v384_v5  ;;  %v396_v16 = vpack.c.bf16 %v180_v15, %v179_v14  ;;  %v400_v20 = vpack.c.bf16 %v182_v18, %v181_v17  ;;  %v184_v21 = vld [vmem:[%s570_s5 + $0x28] sm:$0xff]  ;;  %v185_v23 = vld [vmem:[%s570_s5 + $0x30] sm:$0xff]  ;;  %v186_v24 = vld [vmem:[%s570_s5 + $0x38] sm:$0xff]  ;;  %v162_v4 = vsub.s32 0, %v161_v2 }
   0x7   :  { %v404_v22 = vpack.c.bf16 %v184_v21, %v183_v19  ;;  %v408_v25 = vpack.c.bf16 %v186_v24, %v185_v23  ;;  %v187_v26 = vld [vmem:[%s570_s5 + $0x40] sm:$0xff]  ;;  %v188_v27 = vld [vmem:[%s570_s5 + $0x48] sm:$0xff]  ;;  %v189_v29 = vld [vmem:[%s570_s5 + $0x50] sm:$0xff] }
   0x8   :  { %397 = vmatprep.subr.bf16.mxu1 %v396_v16  ;;  %v412_v28 = vpack.c.bf16 %v188_v27, %v187_v26  ;;  %v190_v30 = vld [vmem:[%s570_s5 + $0x58] sm:$0xff]  ;;  %v191_v32 = vld [vmem:[%s570_s5 + $0x60] sm:$0xff]  ;;  %v192_v33 = vld [vmem:[%s570_s5 + $0x68] sm:$0xff] }
   0x9   :  { %387 = vmatpush3.bf16.msra.mxu0 %v384_v5  ;;  %399 = vmatpush3.bf16.msra.mxu1 %v396_v16  ;;  %v416_v31 = vpack.c.bf16 %v190_v30, %v189_v29  ;;  %v420_v34 = vpack.c.bf16 %v192_v33, %v191_v32  ;;  %v193_v35 = vld [vmem:[%s570_s5 + $0x70] sm:$0xff]  ;;  %v194_v36 = vld [vmem:[%s570_s5 + $0x78] sm:$0xff]  ;;  %v294_v38 = vld [vmem:[%s571_s2] ss:$0 sm:$0xff] }
   0xa   :  { %389 = vmatprep.subr.bf16.mxu0 %v388_v9  ;;  %401 = vmatprep.subr.bf16.mxu1 %v400_v20  ;;  %v424_v37 = vpack.c.bf16 %v194_v36, %v193_v35  ;;  %v152_v3 = vld [vmem:[%s572_s3] sm:$0x1] }
   0xb   :  { %v156_v7 = vld [vmem:[%s573_s4] sm:$0x1] }
   0xc   :  { %v297_v18 = vld [vmem:[%s574_s6] ss:$0 sm:$0xff] }
   0xd   :  { %391 = vmatpush3.bf16.msra.mxu0 %v388_v9  ;;  %403 = vmatpush3.bf16.msra.mxu1 %v400_v20 }
   0xe   :  { %393 = vmatprep.subr.bf16.mxu0 %v392_v12  ;;  %405 = vmatprep.subr.bf16.mxu1 %v404_v22 }
  0x11   :  { %395 = vmatpush3.bf16.msra.mxu0 %v392_v12  ;;  %407 = vmatpush3.bf16.msra.mxu1 %v404_v22 }
  0x12   :  { %409 = vmatprep.subr.bf16.mxu1 %v408_v25 }
  0x14   :  { %343 = vmatmul.mubr.msk.f32.vlgmr.msra.gmra.mrb[0].mxu0 %vm49_vm0, %v33_v13 }
  0x15   :  { %411 = vmatpush3.bf16.msra.mxu1 %v408_v25 }
  0x16   :  { %413 = vmatprep.subr.bf16.mxu1 %v412_v28 }
  0x19   :  { %415 = vmatpush3.bf16.msra.mxu1 %v412_v28 }
  0x1a   :  { %417 = vmatprep.subr.bf16.mxu1 %v416_v31 }
  0x1d   :  { %419 = vmatpush3.bf16.msra.mxu1 %v416_v31 }
  0x1e   :  { %421 = vmatprep.subr.bf16.mxu1 %v420_v34 }
  0x21   :  { %423 = vmatpush3.bf16.msra.mxu1 %v420_v34 }
  0x22   :  { %425 = vmatprep.subr.bf16.mxu1 %v424_v37 }
  0x25   :  { %427 = vmatpush3.bf16.msra.mxu1 %v424_v37 }
  0xe7   :  { %v344_v39 = vpop.f32.mrb[0].mxu0 }
  0xe8   :  { %v128_v40 = vadd.f32 %v344_v39, %v294_v38  ;;  %v122_v41 = vpop.f32.mrb[1].mxu0 }
  0xe9   :  { %v123_v42 = vadd.f32 %v294_v38, %v122_v41 }
  0xea   :  { %v139_v43 = vmul.f32 %v128_v40, %v128_v40 }
  0xeb   :  { %v131_v44 = vadd.f32 %v128_v40, %v123_v42  ;;  %v138_v45 = vmul.f32 %v123_v42, %v123_v42 }
  0xed   :  { %v132_v46 = vrot.slane %v131_v44, 4  ;;  %v140_v47 = vadd.f32 %v139_v43, %v138_v45 }
  0xef   :  { %v133_v48 = vadd.f32 %v132_v46, %v131_v44  ;;  %v141_v49 = vrot.slane %v140_v47, 4 }
  0xf1   :  { %v134_v50 = vrot.slane %v133_v48, 2  ;;  %v142_v51 = vadd.f32 %v141_v49, %v140_v47 }
  0xf3   :  { %v135_v52 = vadd.f32 %v134_v50, %v133_v48  ;;  %v143_v53 = vrot.slane %v142_v51, 2 }
  0xf5   :  { %v144_v54 = vadd.f32 %v143_v53, %v142_v51  ;;  %v136_v55 = vrot.slane %v135_v52, 1 }
  0xf7   :  { %v145_v56 = vrot.slane %v144_v54, 1  ;;  %v137_v57 = vadd.f32 %v136_v55, %v135_v52 }
  0xf9   :  { %v146_v58 = vadd.f32 %v145_v56, %v144_v54  ;;  %v147_v59 = vmul.f32 0.0625, %v137_v57 }
  0xfb   :  { %v148_v60 = vmul.f32 0.0625, %v146_v58  ;;  %v149_v61 = vmul.f32 %v147_v59, %v147_v59 }
  0xfd   :  { %v150_v62 = vsub.f32 %v148_v60, %v149_v61 }
  0xff   :  { %v151_v63 = vmax.f32 %v150_v62, 0.0 }
 0x101   :  { %v153_v0 = vadd.f32 1e-05, %v151_v63 }
 0x103   :  { %428 = vrsqrt.f32 %v153_v0 }
 0x10d   :  { %v429_v5 = vpop.eup %428 }
 0x10e   :  { %v155_v6 = vmul.f32 %v429_v5, %v152_v3 }
 0x110   :  { %v157_v8 = vmul.f32 %v155_v6, %v147_v59  ;;  %v163_v9 = vrot.slane %v155_v6, %v162_v4 }
 0x112   :  { %v158_v10 = vsub.f32 %v156_v7, %v157_v8  ;;  %v165_v11 = vmul.f32 %v163_v9, %v123_v42  ;;  %v166_v12 = vmul.f32 %v163_v9, %v128_v40 }
 0x114   :  { %v171_v13 = vrot.slane %v158_v10, %v162_v4 }
 0x116   :  { %v173_v14 = vadd.f32 %v171_v13, %v165_v11  ;;  %v174_v15 = vadd.f32 %v171_v13, %v166_v12 }
 0x118   :  { %v175_v16 = vmax.f32 %v173_v14, 0.0  ;;  %v176_v17 = vmax.f32 %v174_v15, 0.0 }
 0x11a   :  { %377 = vmatprep.mubr.f32.mxu1 %v175_v16 }
 0x11b   :  { %378 = vmatmul.mubr.f32.vlgmr.msra.gmra.mrb[0].mxu1 %v176_v17 }
 0x1ee   :  { %v379_v19 = vpop.f32.mrb[0].mxu1 }
 0x1ef   :  { %v287_v20 = vadd.f32 %v379_v19, %v297_v18  ;;  %v261_v21 = vpop.f32.mrb[1].mxu1 }
 0x1f0   :  { %v286_v22 = vadd.f32 %v297_v18, %v261_v21 }
 0x1f1   :  { %289 = vst [vmem:[%s575_s7 + $0x8] sm:$0xff] %v287_v20 }
 0x1f2   :  { %288 = vst [vmem:[%s575_s7] sm:$0xff] %v286_v22 }

</bundles_post_ra>
